<compile_context>
chip_gen: v5e
topology: v5e:2x2
jax: 0.10.0
libtpu: 0.0.40
codegen_flags: <defaults>
</compile_context>

<pallas_src>
import functools

import jax
import jax.numpy as jnp
from jax import lax
from jax.experimental import pallas as pl
from jax.experimental.pallas import tpu as pltpu


# --------------------------------------------------------------------------- #
# Kernel A: ConvTranspose2d(k=2, s=2) as one lane-dense matmul per batch item.
# --------------------------------------------------------------------------- #

def _deconv2x2_kernel(x_ref, w_ref, b_ref, o_ref):
    # x_ref: (1, Ci, M1) bf16, w_ref: (4*Co, Ci) bf16, b_ref: (4*Co, 1) f32
    y = jnp.dot(w_ref[...], x_ref[0], preferred_element_type=jnp.float32)
    o_ref[0] = (y + b_ref[...]).astype(o_ref.dtype)


def conv_transpose2x2_s2(x1_nchw, w_iokk, b):
    """nn.ConvTranspose2d(Ci, Co, kernel_size=2, stride=2); NCHW in/out."""
    B, Ci, H1, W1 = x1_nchw.shape
    _, Co, _, _ = w_iokk.shape
    M1 = H1 * W1

    x1f = x1_nchw.reshape(B, Ci, M1).astype(jnp.bfloat16)
    # rows ordered (kh, kw, co):  W_A[(kh*2+kw)*Co + co, ci] = w[ci, co, kh, kw]
    wA = jnp.transpose(w_iokk, (2, 3, 1, 0)).reshape(4 * Co, Ci)
    wA = wA.astype(jnp.bfloat16)
    bA = jnp.tile(b, 4).reshape(4 * Co, 1).astype(jnp.float32)

    yA = pl.pallas_call(
        _deconv2x2_kernel,
        out_shape=jax.ShapeDtypeStruct((B, 4 * Co, M1), jnp.bfloat16),
        grid_spec=pltpu.PrefetchScalarGridSpec(
            num_scalar_prefetch=0,
            grid=(B,),
            in_specs=[
                pl.BlockSpec((1, Ci, M1), lambda i: (i, 0, 0)),
                pl.BlockSpec((4 * Co, Ci), lambda i: (0, 0)),
                pl.BlockSpec((4 * Co, 1), lambda i: (0, 0)),
            ],
            out_specs=pl.BlockSpec((1, 4 * Co, M1), lambda i: (i, 0, 0)),
        ),
        compiler_params=pltpu.CompilerParams(
            dimension_semantics=("parallel",)),
    )(x1f, wA, bA)

    # (B, kh, kw, Co, H1, W1) -> (B, Co, H1, kh, W1, kw) -> (B, Co, 2H1, 2W1)
    y6 = yA.reshape(B, 2, 2, Co, H1, W1)
    y6 = jnp.transpose(y6, (0, 3, 4, 1, 5, 2))
    return y6.reshape(B, Co, 2 * H1, 2 * W1)


# --------------------------------------------------------------------------- #
# Kernel B: fused  concat -> conv3x3+BN+ReLU -> conv3x3+BN+ReLU
# Inputs are "extended flat" slabs:  zero-padded (Hp, Wp) image flattened to
# Mp = Hp*Wp lanes, with P = Wp+1 extra zero lanes on both ends so every
# 3x3 tap is a plain contiguous slice of length Mp.
# --------------------------------------------------------------------------- #

def _double_conv_kernel(x2_ref, up_ref, w1a_ref, w1b_ref, b1_ref,
                        w2_ref, b2_ref, mask_ref, o_ref, h1_ref, *, Hp, Wp):
    Mp = Hp * Wp
    P = Wp + 1

    def taps():
        for dy in range(3):
            for dx in range(3):
                yield dy * 3 + dx, P + (dy - 1) * Wp + (dx - 1)

    # ---- conv1 (+ folded BN1): K-split over [x2 | up(x1)] channels ----
    acc1 = None
    for t, s in taps():
        d = (jnp.dot(w1a_ref[t], x2_ref[0, :, s:s + Mp],
                     preferred_element_type=jnp.float32)
             + jnp.dot(w1b_ref[t], up_ref[0, :, s:s + Mp],
                       preferred_element_type=jnp.float32))
        acc1 = d if acc1 is None else acc1 + d
    # ReLU, then zero the halo ring so it acts as conv2's zero padding.
    h1 = jnp.maximum(acc1 + b1_ref[...], 0.0) * mask_ref[...]

    # stage h1 into the extended-flat VMEM scratch (zero halo on both ends)
    h1_ref[...] = jnp.zeros_like(h1_ref)
    h1_ref[:, P:P + Mp] = h1.astype(h1_ref.dtype)

    # ---- conv2 (+ folded BN2) + ReLU ----
    acc2 = None
    for t, s in taps():
        d = jnp.dot(w2_ref[t], h1_ref[:, s:s + Mp],
                    preferred_element_type=jnp.float32)
        acc2 = d if acc2 is None else acc2 + d
    o_ref[0] = jnp.maximum(acc2 + b2_ref[...], 0.0).astype(o_ref.dtype)


def _fold_bn(w_oihw, b, gamma, beta, mean, var, eps=1e-5):
    scale = gamma / jnp.sqrt(var + eps)
    w_f = w_oihw * scale[:, None, None, None]
    b_f = (b - mean) * scale + beta
    return w_f, b_f


def _ext_flat(img_nchw, P):
    """zero-pad by 1 spatially, flatten HW, add P zero lanes on both ends."""
    B, C, _, _ = img_nchw.shape
    xp = jnp.pad(img_nchw, ((0, 0), (0, 0), (1, 1), (1, 1)))
    flat = xp.reshape(B, C, xp.shape[2] * xp.shape[3])
    return jnp.pad(flat, ((0, 0), (0, 0), (P, P)))


def double_conv_fused(x2_nchw, up_nchw, p):
    """Fused UNetConvBlock on the channel-concat of (x2, up(x1)); NCHW in/out."""
    B, Ci2, H2, W2 = x2_nchw.shape
    Ciu = up_nchw.shape[1]
    Hp, Wp = H2 + 2, W2 + 2
    Mp, P = Hp * Wp, Wp + 1
    L = Mp + 2 * P

    w1f, b1f = _fold_bn(p['c1_w'], p['c1_b'], p['bn1_g'], p['bn1_b'],
                        p['bn1_m'], p['bn1_v'])
    w2f, b2f = _fold_bn(p['c2_w'], p['c2_b'], p['bn2_g'], p['bn2_b'],
                        p['bn2_m'], p['bn2_v'])
    Co1, Co2 = w1f.shape[0], w2f.shape[0]

    # tap-major weight layout: (9, Co, Cin_part), bf16 MXU operands
    w1a = jnp.transpose(w1f[:, :Ci2], (2, 3, 0, 1)).reshape(9, Co1, Ci2)
    w1b = jnp.transpose(w1f[:, Ci2:], (2, 3, 0, 1)).reshape(9, Co1, Ciu)
    w2m = jnp.transpose(w2f, (2, 3, 0, 1)).reshape(9, Co2, Co1)
    w1a = w1a.astype(jnp.bfloat16)
    w1b = w1b.astype(jnp.bfloat16)
    w2m = w2m.astype(jnp.bfloat16)
    b1c = b1f.reshape(Co1, 1).astype(jnp.float32)
    b2c = b2f.reshape(Co2, 1).astype(jnp.float32)

    # interior mask (1 inside the image, 0 on the halo ring)
    mask = jnp.zeros((Hp, Wp), jnp.float32).at[1:-1, 1:-1].set(1.0)
    mask = mask.reshape(1, Mp)

    x2e = _ext_flat(x2_nchw.astype(jnp.bfloat16), P)
    upe = _ext_flat(up_nchw.astype(jnp.bfloat16), P)

    kern = functools.partial(_double_conv_kernel, Hp=Hp, Wp=Wp)
    out = pl.pallas_call(
        kern,
        out_shape=jax.ShapeDtypeStruct((B, Co2, Mp), jnp.float32),
        grid_spec=pltpu.PrefetchScalarGridSpec(
            num_scalar_prefetch=0,
            grid=(B,),
            in_specs=[
                pl.BlockSpec((1, Ci2, L), lambda i: (i, 0, 0)),
                pl.BlockSpec((1, Ciu, L), lambda i: (i, 0, 0)),
                pl.BlockSpec((9, Co1, Ci2), lambda i: (0, 0, 0)),
                pl.BlockSpec((9, Co1, Ciu), lambda i: (0, 0, 0)),
                pl.BlockSpec((Co1, 1), lambda i: (0, 0)),
                pl.BlockSpec((9, Co2, Co1), lambda i: (0, 0, 0)),
                pl.BlockSpec((Co2, 1), lambda i: (0, 0)),
                pl.BlockSpec((1, Mp), lambda i: (0, 0)),
            ],
            out_specs=pl.BlockSpec((1, Co2, Mp), lambda i: (i, 0, 0)),
            scratch_shapes=[pltpu.VMEM((Co1, L), jnp.bfloat16)],
        ),
        compiler_params=pltpu.CompilerParams(
            dimension_semantics=("parallel",)),
    )(x2e, upe, w1a, w1b, b1c, w2m, b2c, mask)

    return out.reshape(B, Co2, Hp, Wp)[:, :, 1:-1, 1:-1]


def up_forward(params, x1_nchw, x2_nchw):
    """Forward of Up(in_channels, out_channels, bilinear=False); NCHW in/out."""
    H2, W2 = x2_nchw.shape[2], x2_nchw.shape[3]

    # self.up
    x1u = conv_transpose2x2_s2(x1_nchw, params['up_w'], params['up_b'])

    # F.pad(x1, [diffX//2, diffX-diffX//2, diffY//2, diffY-diffY//2])
    diffY = H2 - x1u.shape[2]
    diffX = W2 - x1u.shape[3]
    x1u = jnp.pad(x1u, ((0, 0), (0, 0),
                        (diffY // 2, diffY - diffY // 2),
                        (diffX // 2, diffX - diffX // 2)))

    # torch.cat([x2, x1], dim=1) is folded into conv1's K-split inside the
    # fused double-conv kernel.
    return double_conv_fused(x2_nchw, x1u, params)


# --------------------------------------------------------------------------- #
# Pure-JAX reference using the same mixed precision (bf16 operands, f32 acc).
# --------------------------------------------------------------------------- #

def _conv_bn_relu_ref(x_b16, w_oihw, b, g, be, m, v, eps=1e-5):
    w_f, b_f = _fold_bn(w_oihw, b, g, be, m, v, eps)
    y = lax.conv_general_dilated(
        x_b16, w_f.astype(jnp.bfloat16), (1, 1), ((1, 1), (1, 1)),
        dimension_numbers=('NCHW', 'OIHW', 'NCHW'),
        preferred_element_type=jnp.float32)
    return jnp.maximum(y + b_f[None, :, None, None], 0.0)


def up_reference(params, x1_nchw, x2_nchw):
    w = params['up_w']
    B, Ci, H1, W1 = x1_nchw.shape
    Co = w.shape[1]
    y = jnp.einsum('nchw,cokl->nohkwl',
                   x1_nchw.astype(jnp.bfloat16), w.astype(jnp.bfloat16),
                   preferred_element_type=jnp.float32)
    y = y.reshape(B, Co, 2 * H1, 2 * W1) + params['up_b'][None, :, None, None]
    y = y.astype(jnp.bfloat16)

    H2, W2 = x2_nchw.shape[2], x2_nchw.shape[3]
    diffY, diffX = H2 - y.shape[2], W2 - y.shape[3]
    y = jnp.pad(y, ((0, 0), (0, 0),
                    (diffY // 2, diffY - diffY // 2),
                    (diffX // 2, diffX - diffX // 2)))

    x = jnp.concatenate([x2_nchw.astype(jnp.bfloat16), y], axis=1)
    h = _conv_bn_relu_ref(x, params['c1_w'], params['c1_b'],
                          params['bn1_g'], params['bn1_b'],
                          params['bn1_m'], params['bn1_v'])
    h = _conv_bn_relu_ref(h.astype(jnp.bfloat16),
                          params['c2_w'], params['c2_b'],
                          params['bn2_g'], params['bn2_b'],
                          params['bn2_m'], params['bn2_v'])
    return h


# ----------------------------------- main ---------------------------------- #

if __name__ == "__main__":
    IN_CH, OUT_CH = 8, 4          # Up(in_channels=8, out_channels=4)
    C_HALF = IN_CH // 2
    B, H, W = 2, 8, 8             # x1 spatial; x2 is 2x larger

    key = jax.random.PRNGKey(0)
    ks = jax.random.split(key, 20)

    params = {
        # ConvTranspose2d(C//2, C//2, k=2, s=2): weight (Cin, Cout, 2, 2)
        'up_w': 0.1 * jax.random.normal(ks[0], (C_HALF, C_HALF, 2, 2), jnp.float32),
        'up_b': 0.1 * jax.random.normal(ks[1], (C_HALF,), jnp.float32),
        # Conv2d(IN_CH, OUT_CH, 3, pad=1)
        'c1_w': 0.1 * jax.random.normal(ks[2], (OUT_CH, IN_CH, 3, 3), jnp.float32),
        'c1_b': 0.1 * jax.random.normal(ks[3], (OUT_CH,), jnp.float32),
        'bn1_g': 1.0 + 0.1 * jax.random.normal(ks[4], (OUT_CH,), jnp.float32),
        'bn1_b': 0.1 * jax.random.normal(ks[5], (OUT_CH,), jnp.float32),
        'bn1_m': 0.1 * jax.random.normal(ks[6], (OUT_CH,), jnp.float32),
        'bn1_v': 0.5 + jax.random.uniform(ks[7], (OUT_CH,), jnp.float32),
        # Conv2d(OUT_CH, OUT_CH, 3, pad=1)
        'c2_w': 0.1 * jax.random.normal(ks[8], (OUT_CH, OUT_CH, 3, 3), jnp.float32),
        'c2_b': 0.1 * jax.random.normal(ks[9], (OUT_CH,), jnp.float32),
        'bn2_g': 1.0 + 0.1 * jax.random.normal(ks[10], (OUT_CH,), jnp.float32),
        'bn2_b': 0.1 * jax.random.normal(ks[11], (OUT_CH,), jnp.float32),
        'bn2_m': 0.1 * jax.random.normal(ks[12], (OUT_CH,), jnp.float32),
        'bn2_v': 0.5 + jax.random.uniform(ks[13], (OUT_CH,), jnp.float32),
    }

    x1 = jax.random.normal(ks[14], (B, C_HALF, H, W), jnp.float32)        # NCHW
    x2 = jax.random.normal(ks[15], (B, C_HALF, 2 * H, 2 * W), jnp.float32)

    out = jax.block_until_ready(up_forward(params, x1, x2))
    ref = jax.block_until_ready(up_reference(params, x1, x2))

    assert out.shape == (B, OUT_CH, 2 * H, 2 * W), out.shape
    # Tolerance covers 1-ulp bf16 rounding differences of intermediates caused
    # by differing f32 accumulation orders (bf16 MXU operands on both sides).
    assert jnp.allclose(out, ref, rtol=5e-3, atol=5e-3), \
        float(jnp.max(jnp.abs(out - ref)))

    print("KERNEL_OK")
</pallas_src>

<mosaic_0001>
module attributes {stable_mosaic.version = 11 : i64} {
  func.func @_deconv2x2_kernel(%arg0: i32, %arg1: memref<1x4x64xbf16, #tpu.memory_space<vmem>>, %arg2: memref<16x4xbf16, #tpu.memory_space<vmem>>, %arg3: memref<16x1xf32, #tpu.memory_space<vmem>>, %arg4: memref<1x16x64xbf16, #tpu.memory_space<vmem>>) attributes {dimension_semantics = [#tpu.dimension_semantics<parallel>], iteration_bounds = array<i64: 2>, scalar_prefetch = 0 : i64, scratch_operands = 0 : i64, tpu.core_type = #tpu.core_type<tc>, window_params = [{transform_indices = @transform_0, window_bounds = array<i64: 1, 4, 64>}, {pipeline_mode = #tpu.pipeline_mode<synchronous>, transform_indices = @transform_1, window_bounds = array<i64: 16, 4>}, {pipeline_mode = #tpu.pipeline_mode<synchronous>, transform_indices = @transform_2, window_bounds = array<i64: 16, 1>}, {transform_indices = @transform_3, window_bounds = array<i64: 1, 16, 64>}]} {
    %c0 = arith.constant 0 : index
    %c0_0 = arith.constant 0 : index
    %0 = vector.load %arg2[%c0, %c0_0] : memref<16x4xbf16, #tpu.memory_space<vmem>>, vector<16x4xbf16>
    %c0_1 = arith.constant 0 : index
    %c0_2 = arith.constant 0 : index
    %c0_3 = arith.constant 0 : index
    %1 = vector.load %arg1[%c0_1, %c0_2, %c0_3] : memref<1x4x64xbf16, #tpu.memory_space<vmem>>, vector<1x4x64xbf16>
    %2 = vector.shape_cast %1 : vector<1x4x64xbf16> to vector<4x64xbf16>
    %cst = arith.constant dense<0.000000e+00> : vector<16x64xf32>
    %3 = tpu.matmul %0, %2, %cst {dimension_numbers = #tpu.dot_dimension_numbers<[1], [0], [0], [1], [0, 0, 1, 1], [], []>} : vector<16x4xbf16>, vector<4x64xbf16>, vector<16x64xf32> -> vector<16x64xf32>
    %c0_4 = arith.constant 0 : index
    %c0_5 = arith.constant 0 : index
    %4 = vector.load %arg3[%c0_4, %c0_5] : memref<16x1xf32, #tpu.memory_space<vmem>>, vector<16x1xf32>
    %5 = vector.broadcast %4 : vector<16x1xf32> to vector<16x64xf32>
    %6 = arith.addf %3, %5 : vector<16x64xf32>
    %7 = arith.truncf %6 : vector<16x64xf32> to vector<16x64xbf16>
    %c0_6 = arith.constant 0 : index
    %c0_7 = arith.constant 0 : index
    %c0_8 = arith.constant 0 : index
    %8 = vector.load %arg4[%c0_6, %c0_7, %c0_8] : memref<1x16x64xbf16, #tpu.memory_space<vmem>>, vector<1x16x64xbf16>
    %9 = vector.shape_cast %8 : vector<1x16x64xbf16> to vector<16x64xbf16>
    %10 = vector.shape_cast %7 : vector<16x64xbf16> to vector<1x16x64xbf16>
    tpu.vector_store %arg4[%c0_6, %c0_7, %c0_8], %10 {strides = array<i32>} : memref<1x16x64xbf16, #tpu.memory_space<vmem>>, vector<1x16x64xbf16>,
    return
  }
  func.func @transform_0(%arg0: i32) -> (i32, i32, i32) {
    %c0_i32 = arith.constant 0 : i32
    %c0_i32_0 = arith.constant 0 : i32
    %c0_i32_1 = arith.constant 0 : i32
    return %arg0, %c0_i32, %c0_i32_0 : i32, i32, i32
  }
  func.func @transform_1(%arg0: i32) -> (i32, i32) {
    %c0_i32 = arith.constant 0 : i32
    %c0_i32_0 = arith.constant 0 : i32
    %c0_i32_1 = arith.constant 0 : i32
    return %c0_i32, %c0_i32_0 : i32, i32
  }
  func.func @transform_2(%arg0: i32) -> (i32, i32) {
    %c0_i32 = arith.constant 0 : i32
    %c0_i32_0 = arith.constant 0 : i32
    %c0_i32_1 = arith.constant 0 : i32
    return %c0_i32, %c0_i32_0 : i32, i32
  }
  func.func @transform_3(%arg0: i32) -> (i32, i32, i32) {
    %c0_i32 = arith.constant 0 : i32
    %c0_i32_0 = arith.constant 0 : i32
    %c0_i32_1 = arith.constant 0 : i32
    return %arg0, %c0_i32, %c0_i32_0 : i32, i32, i32
  }
}

</mosaic_0001>

<bundles_post_ra>
// kernel: tpu_custom_call.1
= control target key start
LH: loop header
LB: loop body
LE: loop exit
PB: predicated region body
PF: predicated region fallthrough
CT: control target
= control target key end

     0   :  { %8 = vsyncpa [#allocation3], 0  ;;  %s534_s0 = inlined_call_operand.vmem [shape: bf16[2,4,64], index: 0, kind: input, shape index: {}]   ;;  %s535_s1 = inlined_call_operand.vmem [shape: bf16[16,4], index: 1, kind: input, shape index: {}]   ;;  %s536_s2 = inlined_call_operand.vmem [shape: f32[16,1], index: 2, kind: input, shape index: {}]   ;;  %s537_s3 = inlined_call_operand.hbm [shape: bf16[2,16,64], index: 3, kind: output, shape index: {}]  }
   0x1   :  { %10 = vsyncpa [#allocation3 + $0x1], 0  ;;  %s440_s12 = smov 0   ;;  %s442_s13 = smov 0  }
   0x2   :  { %s444_s14 = smov 0   ;;  %s446_s15 = smov 0  }
   0x3 LB: > { %s461_s16 = sadd.s32 4294967295, %s415_s15   ;;  %s292_s17 = sadd.s32 4294967294, %s415_s15   ;;  %s415_s15 = sphi %s446_s15, %s543_s15   ;;  %s411_s14 = sphi %s444_s14, %s542_s14   ;;  %s407_s13 = sphi %s442_s13, %s541_s13   ;;  %s403_s12 = sphi %s440_s12, %s540_s12  }
   0x4   : > { %s465_s18 = sadd.s32 1, %s415_s15   ;;  %s91_s19 = sadd.s32 1, %s411_s14 }
   0x5   : > { %s88_s20 = ssub.s32 %s415_s15, %s465_s18  ;;  %p101_p0 = scmp.ne.s32.totalorder %s411_s14, %s407_s13 }
   0x6   : > { %p89_p1 = scmp.eq.s32.totalorder %s88_s20, 0  ;;  %p102_p2 = scmp.eq.s32.totalorder %s461_s16, 1 }
   0x7   : > { %p107_p3 = scmp.ne.s32.totalorder %s407_s13, %s403_s12  ;;  %p108_p4 = scmp.eq.s32.totalorder %s292_s17, 1 }
   0x8   : > { %s476_s21 = scalar_select %p89_p1, %s411_s14, %s91_s19  }
   0x9   : > { %p478_p5 = por %p102_p2, %p101_p0  ;;  %p482_p6 = por %p108_p4, %p107_p3 }
   0xa   : > { %p295_p7 = scmp.ge.s32.totalorder %s415_s15, 1  ;;  %p139_p8 = scmp.lt.s32.totalorder %s415_s15, 3 }
   0xc   : > { %p140_p9 = pnand %p295_p7, %p139_p8 }
   0xd   : > { %p162_p10 = scmp.lt.s32.totalorder (!%p140_p9), %s461_s16, 1  ;;  %s159_s8 = sand.u32 (!%p140_p9), 1, %s407_s13  }
   0xe   : > { %143 = sbr.rel (%p140_p9) target bundleno = 170 (0xaa), region = 32  ;;  %s296_s9 = sshll.u32 (!%p140_p9), %s159_s8, 3 }
   0xf   : > { %s309_s10 = sshll.u32 (!%p140_p9), %s461_s16, 3  ;;  %s161_s20 = scalar_lea.vmem (!%p140_p9), [#allocation2], %s296_s9 }
  0x10   : > { %s226_s19 = scalar_lea.hbm (!%p140_p9), %s537_s3, %s309_s10  ;;  %s227_s24 = sshll.u32 (!%p140_p9), %s161_s20, 4  ;;  %s228_s24 = int_to_ptr.vmem [resolvable:$true] %s227_s24 }
  0x11   : > { %s229_s25 = sshll.u32 (!%p140_p9), %s226_s19, 4  ;;  %s230_s25 = int_to_ptr.hbm [resolvable:$true] %s229_s25 }
  0x13   : > { %v170_v0 = vld [vmem:[%s536_s2] sm:$0xff]  ;;  %v417_v1 = vmov 0   ;;  %s163_s26 = scalar_select %p162_p10, %s461_s16, 1  ;;  %vm191_vm0 = vcmask 1041408   ;;  %v171_v5 = vld [vmem:[%s536_s2 + $0x8] sm:$0xff]  ;;  %vm187_vm1 = vcmask 31744  }
  0x14   : > { %352 = vset.pattern.permute.xlu0 %v417_v1  ;;  %v308_v4 = vld [vmem:[%s535_s1] sm:$0xff]  ;;  %vm211_vm2 = vcmask 519168   ;;  %s367_s16 = sshra.s32 %s230_s25, 4  ;;  %s368_s16 = int_to_ptr.hbm [resolvable:$true] %s367_s16 }
  0x15   : > { %174 = vperm.xlu0 %352, %v170_v0   ;;  %s297_s27 = sshll.u32 %s163_s26, 1  ;;  %s215_s26 = scalar_lea.sflag [#allocation3], %s159_s8 }
  0x16   : > { %s165_s30 = scalar_lea.vmem %s534_s0, %s297_s27  ;;  %s369_s27 = scalar_lea.hbm %s368_s16, 8 }
  0x17   : > { %v169_v2 = vld [vmem:[%s165_s30] sm:$0x3]  ;;  %p370_p11 = scmp.ne.s32.totalorder %s368_s16, %s369_s27  ;;  %s373_s30 = scalar_lea.hbm %s537_s3, 16 }
  0x18   : > { %v193_v3 = vsel %vm191_vm0, %v169_v2, 0  ;;  %p374_p0 = scmp.lt.s32.totalorder %s368_s16, %s537_s3  ;;  %p375_p1 = scmp.lt.s32.totalorder %s373_s30, %s369_s27 }
  0x19   : > { %202 = vmatpush.bf16.msra.mxu0 %v193_v3  ;;  %p371_p12 = pnand %p370_p11, %p478_p5 }
  0x1a   : > { %p376_p2 = por %p375_p1, %p374_p0 }
  0x1b   : > { %p372_p13 = pneg %p371_p12 }
  0x1c   : > { %302 = vmatmul.msk.bf16.vlgmr.msra.gmra.mxu0 %vm187_vm1, %v308_v4 }
  0x1d   : > { %179 = vperm.xlu0 %352, %v171_v5   ;;  %p377_p3 = pnand %p376_p2, %p372_p13 }
  0x87   : > { %v175_v6 = vpop.permute.xlu0 %174 }
  0x8f   : > { %v180_v10 = vpop.permute.xlu0 %179 }
  0x99   : > { %v204_v7 = vpop.f32.mrf.mxu0 }
  0x9a   : > { %v205_v8 = vadd.f32 %v204_v7, %v175_v6 }
  0x9c   : > { %v209_v9 = vpack.c.bf16 %v205_v8, %v205_v8 }
  0x9e   : > { %212 = vst.msk [vmem:[%s161_s20] sm:$0xf] %vm211_vm2, %v209_v9 }
  0xa1   : > { %v206_v11 = vpop.f32.mrf.mxu0 }
  0xa2   : > { %v207_v12 = vadd.f32 %v206_v11, %v180_v10 }
  0xa4   : > { %v210_v13 = vpack.c.bf16 %v207_v12, %v207_v12 }
  0xa6   : > { %213 = vst.msk [vmem:[%s161_s20 + $0x4] sm:$0xf] %vm211_vm2, %v210_v13 }
  0xa7   : > { %380 = shalt.err (!%p377_p3)
}
  0xa8   : > { %s418_s6 = smov 64   ;;  %s419_s7 = smov 4  }
  0xa9   : > { %310 = dma.vmem_to_hbm [thread:$0]  (%p478_p5), %s228_s24, 128, %s230_s25, %s215_s26, %s418_s6, %s418_s6, %s419_s7  }
  0xaa PF: > { %p316_p4 = scmp.ge.s32.totalorder %s415_s15, 2  ;;  %s244_s8 = sand.u32 1, %s403_s12  }
  0xab   : > { %s245_s9 = scalar_lea.sflag [#allocation3], %s244_s8 }
  0xac   : > { %p313_p7 = pnand %p316_p4, %p482_p6 }
  0xae   : > { %p314_p8 = pneg %p313_p7 }
  0xb0   : > { %398 = dma.done.wait (%p314_p8), %s245_s9, 128  }
  0xb1   : > { %400 = vsyncadd (%p314_p8), %s245_s9, 4294967168  ;;  %p13_p9 = scmp.ge.s32.totalorder %s465_s18, 4   ;;  %s540_s12 = smov %s407_s13 }
  0xb2   : > { %s541_s13 = smov %s411_s14  ;;  %s542_s14 = smov %s476_s21 }
  0xb3   : > { %s543_s15 = smov %s465_s18  ;;  %15 = sbr.rel (!%p13_p9) target bundleno = 3 (0x3), region = 67 }
  0xb8   :  { %251 = vsyncpa [#allocation3], 1 }
  0xb9   :  { %253 = vsyncpa [#allocation3 + $0x1], 1 }

</bundles_post_ra>
